<compile_context>
chip_gen: v6e
topology: v6e:2x2x1
jax: 0.10.0
libtpu: 0.0.40
codegen_flags: <defaults>
</compile_context>

<pallas_src>
import functools
from typing import NamedTuple, Optional

import jax
import jax.numpy as jnp
from jax.experimental import pallas as pl
from jax.experimental.pallas import tpu as pltpu


def _round_up(v, m):
    return (v + m - 1) // m * m


@functools.lru_cache(maxsize=1)
def _vmem_budget_bytes():
    """~85% of this chip's per-core VMEM (v5e/v6e ~109 MiB, v7x ~54 MiB)."""
    cap = None
    try:
        cap = getattr(pltpu.get_tpu_info(), "vmem_capacity_bytes", None)
    except Exception:
        cap = None
    if not cap:
        cap = 64 << 20  # conservative fallback (v7x per-TC VMEM)
    return int(cap * 0.85)


class FusionNetParams(NamedTuple):
    w1: jax.Array   # [in_size, hid_p]  == linear_1.weight.T, hidden padded to 128
    b1: jax.Array   # [1, hid_p] float32
    w2: jax.Array   # [hid_p, hid_p]    == linear_2.weight.T, padded
    b2: jax.Array   # [1, hid_p] float32
    hidden: int     # un-padded hidden size (static Python int)


def prepare_fusionnet_params(w1_t, b1, w2_t, b2, *, weight_dtype=None):
    """Pad the hidden dim of the weights to a multiple of 128 ONCE at
    model-load time.  w1_t: [in_size, hidden] (= linear_1.weight.T),
    w2_t: [hidden, hidden] (= linear_2.weight.T)."""
    in_size, hidden = w1_t.shape
    hid_p = _round_up(hidden, 128)
    wd = w1_t.dtype if weight_dtype is None else weight_dtype
    w1_p = jnp.pad(w1_t.astype(wd), ((0, 0), (0, hid_p - hidden)))
    w2_p = jnp.pad(w2_t.astype(wd), ((0, hid_p - hidden), (0, hid_p - hidden)))
    b1_p = jnp.pad(b1.astype(jnp.float32), (0, hid_p - hidden)).reshape(1, hid_p)
    b2_p = jnp.pad(b2.astype(jnp.float32), (0, hid_p - hidden)).reshape(1, hid_p)
    return FusionNetParams(w1_p, b1_p, w2_p, b2_p, int(hidden))


def _fusionnet_kernel(x_ref, w1_ref, b1_ref, w2_ref, b2_ref, o_ref):
    # x_ref: (tb, in_size)   w1_ref: (in_size, hid_p)   b1_ref: (1, hid_p) f32
    # w2_ref: (hid_p, hid_p) b2_ref: (1, hid_p) f32     o_ref: (tb, hidden)
    # Dropout in eval mode is the identity.
    # TODO(synk): training-mode dropout would use pltpu.prng_seed + prng_random_bits.
    x = x_ref[...]  # keep native dtype (bf16 stays bf16 into the MXU)
    y1 = jnp.tanh(
        jnp.dot(x, w1_ref[...], preferred_element_type=jnp.float32) + b1_ref[...]
    )
    # Mixed-precision note: y1 is cast to the weight dtype before the second
    # matmul (exact for f32 weights; standard choice for bf16 weights).
    y2 = jnp.tanh(
        jnp.dot(y1.astype(w2_ref.dtype), w2_ref[...],
                preferred_element_type=jnp.float32) + b2_ref[...]
    )
    hidden = o_ref.shape[-1]
    o_ref[...] = y2[:, :hidden].astype(o_ref.dtype)


def _resident_spec(shape):
    """Constant-index, VMEM-resident operand; single-buffered to save VMEM."""
    index_map = lambda i: (0,) * len(shape)
    try:
        return pl.BlockSpec(shape, index_map, pipeline_mode=pl.Buffered(1))
    except TypeError:  # older JAX without the pipeline_mode kwarg
        return pl.BlockSpec(shape, index_map)


@functools.partial(jax.jit, static_argnames=("hidden", "block_batch", "out_dtype"))
def _fusionnet_forward(x, w1_p, b1_p, w2_p, b2_p, *, hidden, block_batch, out_dtype):
    B, in_size = x.shape
    hid_p = w1_p.shape[1]
    out_dtype = x.dtype if out_dtype is None else out_dtype

    # ---- batch tiling --------------------------------------------------------
    B8 = _round_up(max(B, 1), 8)
    tb = max(min(_round_up(block_batch, 8), B8), 8)
    if B8 >= 256 and tb >= B8:
        # A single grid step would idle v7x's second TensorCore; split in two.
        tb = _round_up(pl.cdiv(B8, 2), 128)

    # ---- per-generation VMEM budget ------------------------------------------
    x_item = jnp.dtype(x.dtype).itemsize
    w_item = jnp.dtype(w1_p.dtype).itemsize
    out_item = jnp.dtype(out_dtype).itemsize

    def vmem_need(tb_):
        return (2 * tb_ * in_size * x_item               # x tiles (double-buffered)
                + 2 * tb_ * hidden * out_item            # out tiles (double-buffered)
                + (in_size + hid_p) * hid_p * w_item     # W1 + W2 (single-buffered)
                + 2 * hid_p * 4                          # biases
                + 3 * tb_ * hid_p * 4)                   # f32 intermediates headroom

    budget = _vmem_budget_bytes()
    while vmem_need(tb) > budget and tb > 128:
        tb = max(_round_up(tb // 2, 128), 128)
    if vmem_need(tb) > budget:
        # TODO(synk): K/N-tiled accumulator path for weights that exceed VMEM.
        raise NotImplementedError(
            "FusionNet weights do not fit in VMEM; K/N-tiled path not implemented.")

    grid = (pl.cdiv(B, tb),)
    vmem_limit = min(max(2 * vmem_need(tb), 16 << 20), budget)

    cost = pl.CostEstimate(
        flops=2 * B * (in_size + hid_p) * hid_p,
        transcendentals=2 * B * hid_p,
        bytes_accessed=(B * in_size * x_item + B * hidden * out_item
                        + (in_size + hid_p) * hid_p * w_item + 2 * hid_p * 4),
    )

    return pl.pallas_call(
        _fusionnet_kernel,
        out_shape=jax.ShapeDtypeStruct((B, hidden), out_dtype),
        grid_spec=pltpu.PrefetchScalarGridSpec(
            num_scalar_prefetch=0,
            grid=grid,
            in_specs=[
                pl.BlockSpec((tb, in_size), lambda i: (i, 0)),  # x tile, unpadded
                _resident_spec((in_size, hid_p)),               # W1^T (resident)
                _resident_spec((1, hid_p)),                     # b1
                _resident_spec((hid_p, hid_p)),                 # W2^T (resident)
                _resident_spec((1, hid_p)),                     # b2
            ],
            out_specs=pl.BlockSpec((tb, hidden), lambda i: (i, 0)),
        ),
        compiler_params=pltpu.CompilerParams(
            dimension_semantics=("parallel",),   # batch axis shards across TCs
            vmem_limit_bytes=int(vmem_limit),
        ),
        cost_estimate=cost,
    )(x, w1_p, b1_p, w2_p, b2_p)


def fusionnet_forward(x, params: FusionNetParams, *, block_batch=1024,
                      out_dtype: Optional[object] = None):
    """x: [B, in_size]; params from prepare_fusionnet_params().
    Pass out_dtype=jnp.bfloat16 if the consumer accepts bf16 (halves the output
    HBM write traffic; tanh outputs are in [-1, 1])."""
    return _fusionnet_forward(
        x, params.w1, params.b1, params.w2, params.b2,
        hidden=int(params.hidden), block_batch=int(block_batch),
        out_dtype=out_dtype)


def _reference(x, w1_t, b1, w2_t, b2):
    y1 = jnp.tanh(x.astype(jnp.float32) @ w1_t.astype(jnp.float32)
                  + b1.astype(jnp.float32))
    y2 = jnp.tanh(y1 @ w2_t.astype(jnp.float32) + b2.astype(jnp.float32))
    return y2.astype(x.dtype)


if __name__ == "__main__":
    # Small shapes consistent with the module: batch=8, in_size=16, hidden=32.
    batch, in_size, hidden = 8, 16, 32

    key = jax.random.PRNGKey(0)
    kx, kw1, kb1, kw2, kb2, kx2 = jax.random.split(key, 6)

    x = jax.random.normal(kx, (batch, in_size), dtype=jnp.float32)

    # Deterministic PyTorch-like init (uniform bound 1/sqrt(fan_in)), stored
    # pre-transposed: [in_size, hidden] == (nn.Linear.weight).T
    bound1 = 1.0 / (in_size ** 0.5)
    bound2 = 1.0 / (hidden ** 0.5)
    w1_t = jax.random.uniform(kw1, (in_size, hidden), jnp.float32, -bound1, bound1)
    b1 = jax.random.uniform(kb1, (hidden,), jnp.float32, -bound1, bound1)
    w2_t = jax.random.uniform(kw2, (hidden, hidden), jnp.float32, -bound2, bound2)
    b2 = jax.random.uniform(kb2, (hidden,), jnp.float32, -bound2, bound2)

    # Pad the weights ONCE (model-load time), not per forward call.
    params = prepare_fusionnet_params(w1_t, b1, w2_t, b2)

    # Toy-shape case (single grid step, full-dim feature axes, no padding of x).
    out = jax.block_until_ready(fusionnet_forward(x, params))
    ref = _reference(x, w1_t, b1, w2_t, b2)
    assert out.shape == (batch, hidden)
    assert jnp.allclose(out, ref, atol=1e-5, rtol=1e-5), "mismatch vs reference (small)"

    # Larger, non-divisible batch: exercises the 2-way tile split (>=256 rows),
    # the multi-step grid, and the masked edge block (300 % 256 != 0).
    big_b = 300
    x_big = jax.random.normal(kx2, (big_b, in_size), dtype=jnp.float32)
    out_big = jax.block_until_ready(fusionnet_forward(x_big, params))
    ref_big = _reference(x_big, w1_t, b1, w2_t, b2)
    assert out_big.shape == (big_b, hidden)
    assert jnp.allclose(out_big, ref_big, atol=1e-5, rtol=1e-5), "mismatch vs reference (big)"

    print("KERNEL_OK")
</pallas_src>

<mosaic_0001>
module attributes {stable_mosaic.version = 11 : i64} {
  func.func @_fusionnet_kernel(%arg0: i32, %arg1: memref<8x16xf32, #tpu.memory_space<vmem>>, %arg2: memref<16x128xf32, #tpu.memory_space<vmem>>, %arg3: memref<1x128xf32, #tpu.memory_space<vmem>>, %arg4: memref<128x128xf32, #tpu.memory_space<vmem>>, %arg5: memref<1x128xf32, #tpu.memory_space<vmem>>, %arg6: memref<8x32xf32, #tpu.memory_space<vmem>>) attributes {dimension_semantics = [#tpu.dimension_semantics<parallel>], iteration_bounds = array<i64: 1>, scalar_prefetch = 0 : i64, scratch_operands = 0 : i64, tpu.core_type = #tpu.core_type<tc>, window_params = [{transform_indices = @transform_0, window_bounds = array<i64: 8, 16>}, {pipeline_mode = #tpu.pipeline_mode<synchronous>, transform_indices = @transform_1, window_bounds = array<i64: 16, 128>}, {pipeline_mode = #tpu.pipeline_mode<synchronous>, transform_indices = @transform_2, window_bounds = array<i64: 1, 128>}, {pipeline_mode = #tpu.pipeline_mode<synchronous>, transform_indices = @transform_3, window_bounds = array<i64: 128, 128>}, {pipeline_mode = #tpu.pipeline_mode<synchronous>, transform_indices = @transform_4, window_bounds = array<i64: 1, 128>}, {transform_indices = @transform_5, window_bounds = array<i64: 8, 32>}]} {
    %c0 = arith.constant 0 : index
    %c0_0 = arith.constant 0 : index
    %0 = vector.load %arg1[%c0, %c0_0] : memref<8x16xf32, #tpu.memory_space<vmem>>, vector<8x16xf32>
    %c0_1 = arith.constant 0 : index
    %c0_2 = arith.constant 0 : index
    %1 = vector.load %arg2[%c0_1, %c0_2] : memref<16x128xf32, #tpu.memory_space<vmem>>, vector<16x128xf32>
    %cst = arith.constant dense<0.000000e+00> : vector<8x128xf32>
    %2 = tpu.matmul %0, %1, %cst {dimension_numbers = #tpu.dot_dimension_numbers<[1], [0], [0], [1], [0, 0, 1, 1], [], []>} : vector<8x16xf32>, vector<16x128xf32>, vector<8x128xf32> -> vector<8x128xf32>
    %c0_3 = arith.constant 0 : index
    %c0_4 = arith.constant 0 : index
    %3 = vector.load %arg3[%c0_3, %c0_4] : memref<1x128xf32, #tpu.memory_space<vmem>>, vector<1x128xf32>
    %4 = vector.broadcast %3 : vector<1x128xf32> to vector<8x128xf32>
    %5 = arith.addf %2, %4 : vector<8x128xf32>
    %6 = math.tanh %5 : vector<8x128xf32>
    %c0_5 = arith.constant 0 : index
    %c0_6 = arith.constant 0 : index
    %7 = vector.load %arg4[%c0_5, %c0_6] : memref<128x128xf32, #tpu.memory_space<vmem>>, vector<128x128xf32>
    %cst_7 = arith.constant dense<0.000000e+00> : vector<8x128xf32>
    %8 = tpu.matmul %6, %7, %cst_7 {dimension_numbers = #tpu.dot_dimension_numbers<[1], [0], [0], [1], [0, 0, 1, 1], [], []>} : vector<8x128xf32>, vector<128x128xf32>, vector<8x128xf32> -> vector<8x128xf32>
    %c0_8 = arith.constant 0 : index
    %c0_9 = arith.constant 0 : index
    %9 = vector.load %arg5[%c0_8, %c0_9] : memref<1x128xf32, #tpu.memory_space<vmem>>, vector<1x128xf32>
    %10 = vector.broadcast %9 : vector<1x128xf32> to vector<8x128xf32>
    %11 = arith.addf %8, %10 : vector<8x128xf32>
    %12 = math.tanh %11 : vector<8x128xf32>
    %13 = vector.extract_strided_slice %12 {offsets = [0, 0], sizes = [8, 32], strides = [1, 1]} : vector<8x128xf32> to vector<8x32xf32>
    %c0_10 = arith.constant 0 : index
    %c0_11 = arith.constant 0 : index
    %14 = vector.load %arg6[%c0_10, %c0_11] : memref<8x32xf32, #tpu.memory_space<vmem>>, vector<8x32xf32>
    tpu.vector_store %arg6[%c0_10, %c0_11], %13 {strides = array<i32>} : memref<8x32xf32, #tpu.memory_space<vmem>>, vector<8x32xf32>,
    return
  }
  func.func @transform_0(%arg0: i32) -> (i32, i32) {
    %c0_i32 = arith.constant 0 : i32
    %c0_i32_0 = arith.constant 0 : i32
    return %arg0, %c0_i32 : i32, i32
  }
  func.func @transform_1(%arg0: i32) -> (i32, i32) {
    %c0_i32 = arith.constant 0 : i32
    %c0_i32_0 = arith.constant 0 : i32
    %c0_i32_1 = arith.constant 0 : i32
    return %c0_i32, %c0_i32_0 : i32, i32
  }
  func.func @transform_2(%arg0: i32) -> (i32, i32) {
    %c0_i32 = arith.constant 0 : i32
    %c0_i32_0 = arith.constant 0 : i32
    %c0_i32_1 = arith.constant 0 : i32
    return %c0_i32, %c0_i32_0 : i32, i32
  }
  func.func @transform_3(%arg0: i32) -> (i32, i32) {
    %c0_i32 = arith.constant 0 : i32
    %c0_i32_0 = arith.constant 0 : i32
    %c0_i32_1 = arith.constant 0 : i32
    return %c0_i32, %c0_i32_0 : i32, i32
  }
  func.func @transform_4(%arg0: i32) -> (i32, i32) {
    %c0_i32 = arith.constant 0 : i32
    %c0_i32_0 = arith.constant 0 : i32
    %c0_i32_1 = arith.constant 0 : i32
    return %c0_i32, %c0_i32_0 : i32, i32
  }
  func.func @transform_5(%arg0: i32) -> (i32, i32) {
    %c0_i32 = arith.constant 0 : i32
    %c0_i32_0 = arith.constant 0 : i32
    return %arg0, %c0_i32 : i32, i32
  }
}

</mosaic_0001>

<bundles_post_ra>
// kernel: _fusionnet_forward.1
= control target key start
LH: loop header
LB: loop body
LE: loop exit
PB: predicated region body
PF: predicated region fallthrough
CT: control target
= control target key end

     0   :  { %10 = vsyncpa [#allocation3], 0  ;;  %s476_s0 = inlined_call_operand.hbm [shape: f32[8,16], index: 0, kind: input, shape index: {}]   ;;  %s477_s1 = inlined_call_operand.hbm [shape: f32[16,128], index: 1, kind: input, shape index: {}]   ;;  %s478_s2 = inlined_call_operand.vmem [shape: f32[1,128], index: 2, kind: input, shape index: {}]   ;;  %s479_s3 = inlined_call_operand.hbm [shape: f32[128,128], index: 3, kind: input, shape index: {}]   ;;  %s480_s4 = inlined_call_operand.vmem [shape: f32[1,128], index: 4, kind: input, shape index: {}]   ;;  %s481_s5 = inlined_call_operand.hbm [shape: f32[8,32], index: 5, kind: output, shape index: {}]  }
   0x1   :  { %11 = vsyncpa [#allocation6], 0 }
   0x2   :  { %12 = vsyncpa [#allocation4], 0  ;;  %s420_s18 = smov [#allocation5]  }
   0x3   :  { %s28_s19 = sshll.u32 %s420_s18, 4  ;;  %s29_s19 = int_to_ptr.vmem [resolvable:$true] %s28_s19 }
   0x4   :  { %s342_s20 = scalar_lea.vmem %s29_s19, 256  ;;  %p347_p1 = scmp.lt.s32.totalorder %s29_s19, %s29_s19 }
   0x5   :  { %p343_p0 = scmp.ne.s32.totalorder %s29_s19, %s342_s20  ;;  %p348_p2 = scmp.lt.s32.totalorder %s342_s20, %s342_s20 }
   0x7   :  { %p349_p3 = por %p348_p2, %p347_p1 }
   0x9   :  { %p350_p4 = pnand %p349_p3, %p343_p0 }
   0xb   :  { %353 = shalt.err (!%p350_p4)
}
   0xc   :  { %s421_s21 = smov 128   ;;  %s422_s22 = smov 8  }
   0xd   :  { %34 = dma.hbm_to_vmem [thread:$0]  %s477_s1, 256, %s29_s19, [#allocation6], %s421_s21, %s421_s21, %s422_s22  }
   0xe   :  { %s423_s25 = smov [#allocation2]   ;;  %s424_s27 = smov [#allocation7]  }
   0xf   :  { %s19_s26 = sshll.u32 %s423_s25, 4  ;;  %s42_s28 = sshll.u32 %s424_s27, 4  ;;  %s20_s26 = int_to_ptr.vmem [resolvable:$true] %s19_s26  ;;  %s43_s28 = int_to_ptr.vmem [resolvable:$true] %s42_s28 }
  0x10   :  { %s362_s29 = scalar_lea.vmem %s20_s26, 128  ;;  %p367_p6 = scmp.lt.s32.totalorder %s20_s26, %s20_s26 }
  0x11   :  { %p363_p5 = scmp.ne.s32.totalorder %s20_s26, %s362_s29  ;;  %p368_p7 = scmp.lt.s32.totalorder %s362_s29, %s362_s29 }
  0x13   :  { %p369_p8 = por %p368_p7, %p367_p6 }
  0x15   :  { %p370_p9 = pnand %p369_p8, %p363_p5 }
  0x17   :  { %373 = shalt.err (!%p370_p9)
}
  0x18   :  { %22 = dma.hbm_to_vmem [thread:$0]  %s476_s0, 128, %s20_s26, [#allocation3]  }
  0x19   :  { %s382_s7 = scalar_lea.vmem %s43_s28, 2048  ;;  %p387_p11 = scmp.lt.s32.totalorder %s43_s28, %s43_s28 }
  0x1a   :  { %p383_p10 = scmp.ne.s32.totalorder %s43_s28, %s382_s7  ;;  %p388_p12 = scmp.lt.s32.totalorder %s382_s7, %s382_s7 }
  0x1c   :  { %p389_p13 = por %p388_p12, %p387_p11 }
  0x1e   :  { %p390_p0 = pnand %p389_p13, %p383_p10 }
  0x20   :  { %393 = shalt.err (!%p390_p0)
}
  0x21   :  { %48 = dma.hbm_to_vmem [thread:$0]  %s479_s3, 2048, %s43_s28, [#allocation6], %s421_s21, %s421_s21, %s422_s22  }
  0x22   :  { %414 = dma.done.wait [#allocation3], 128  }
  0x23   :  { %415 = vsyncadd [#allocation3], 4294967168 }
  0x24   :  { %416 = dma.done.wait [#allocation6], 2304  }
  0x25   :  { %417 = vsyncadd [#allocation6], 4294964992  ;;  %v425_v0 = vmov 0.0   ;;  %vm426_vm0 = vmmov 0   ;;  %v62_v1 = vld [vmem:[#allocation5 + $0x8] sm:$0xff]  ;;  %v61_v2 = vld [vmem:[#allocation5] sm:$0xff] }
  0x26   :  { %280 = vmatprep.subr.mxu0 %v425_v0  ;;  %284 = vmatprep.mubr.msk.f32.mxu0 %vm426_vm0, %v425_v0  ;;  %v60_v3 = vld [vmem:[#allocation2] sm:$0xff]  ;;  %vm70_vm1 = vcmask 130048   ;;  %v160_v4 = vld [vmem:[#allocation7 + $0x78] sm:$0xff]  ;;  %v159_v5 = vld [vmem:[#allocation7 + $0x70] sm:$0xff]  ;;  %s427_s11 = smov [#allocation8]   ;;  %vm239_vm2 = vcmask 261120  }
  0x27   :  { %287 = vmatprep.subr.mxu1 %v425_v0  ;;  %319 = vmatprep.mubr.msk.f32.mxu1 %vm426_vm0, %v425_v0  ;;  %v158_v6 = vld [vmem:[#allocation7 + $0x68] sm:$0xff]  ;;  %v157_v7 = vld [vmem:[#allocation7 + $0x60] sm:$0xff]  ;;  %v156_v8 = vld [vmem:[#allocation7 + $0x58] sm:$0xff]  ;;  %s247_s12 = sshll.u32 %s427_s11, 4  ;;  %s248_s12 = int_to_ptr.vmem [resolvable:$true] %s247_s12 }
  0x28   :  { %281 = vmatpush3.msra.mxu0 %v62_v1  ;;  %288 = vmatpush3.msra.mxu1 %v160_v4  ;;  %v155_v9 = vld [vmem:[#allocation7 + $0x50] sm:$0xff]  ;;  %v154_v10 = vld [vmem:[#allocation7 + $0x48] sm:$0xff]  ;;  %v153_v11 = vld [vmem:[#allocation7 + $0x40] sm:$0xff]  ;;  %p399_p2 = scmp.lt.s32.totalorder %s248_s12, %s248_s12 }
  0x29   :  { %282 = vmatprep.subr.mxu0 %v425_v0  ;;  %289 = vmatprep.subr.mxu1 %v425_v0  ;;  %v152_v12 = vld [vmem:[#allocation7 + $0x38] sm:$0xff]  ;;  %v151_v13 = vld [vmem:[#allocation7 + $0x30] sm:$0xff]  ;;  %v150_v14 = vld [vmem:[#allocation7 + $0x28] sm:$0xff] }
  0x2a   :  { %283 = vmatpush3.msra.mxu0 %v61_v2  ;;  %290 = vmatpush3.msra.mxu1 %v159_v5  ;;  %v149_v15 = vld [vmem:[#allocation7 + $0x20] sm:$0xff]  ;;  %v148_v16 = vld [vmem:[#allocation7 + $0x18] sm:$0xff]  ;;  %v147_v17 = vld [vmem:[#allocation7 + $0x10] sm:$0xff] }
  0x2b   :  { %285 = vmatmul.mubr.msk.f32.vlgmr.msra.gmra.mxu0 %vm70_vm1, %v60_v3  ;;  %291 = vmatprep.subr.mxu1 %v425_v0  ;;  %v146_v18 = vld [vmem:[#allocation7 + $0x8] sm:$0xff]  ;;  %v145_v19 = vld [vmem:[#allocation7] sm:$0xff] }
  0x2c   :  { %292 = vmatpush3.msra.mxu1 %v158_v6  ;;  %v257_v20 = vld [vmem:[%s478_s2] ss:$0 sm:$0xff]  ;;  %s394_s2 = scalar_lea.vmem %s248_s12, 128 }
  0x2d   :  { %293 = vmatprep.subr.mxu1 %v425_v0  ;;  %v259_v25 = vld [vmem:[%s480_s4] ss:$0 sm:$0xff]  ;;  %p395_p1 = scmp.ne.s32.totalorder %s248_s12, %s394_s2  ;;  %p400_p3 = scmp.lt.s32.totalorder %s394_s2, %s394_s2 }
  0x2e   :  { %294 = vmatpush3.msra.mxu1 %v157_v7 }
  0x2f   :  { %295 = vmatprep.subr.mxu1 %v425_v0  ;;  %p401_p4 = por %p400_p3, %p399_p2 }
  0x30   :  { %296 = vmatpush3.msra.mxu1 %v156_v8 }
  0x31   :  { %297 = vmatprep.subr.mxu1 %v425_v0  ;;  %p402_p5 = pnand %p401_p4, %p395_p1 }
  0x32   :  { %298 = vmatpush3.msra.mxu1 %v155_v9 }
  0x33   :  { %299 = vmatprep.subr.mxu1 %v425_v0 }
  0x34   :  { %300 = vmatpush3.msra.mxu1 %v154_v10 }
  0x35   :  { %301 = vmatprep.subr.mxu1 %v425_v0 }
  0x36   :  { %302 = vmatpush3.msra.mxu1 %v153_v11 }
  0x37   :  { %303 = vmatprep.subr.mxu1 %v425_v0 }
  0x38   :  { %304 = vmatpush3.msra.mxu1 %v152_v12 }
  0x39   :  { %305 = vmatprep.subr.mxu1 %v425_v0 }
  0x3a   :  { %306 = vmatpush3.msra.mxu1 %v151_v13 }
  0x3b   :  { %307 = vmatprep.subr.mxu1 %v425_v0 }
  0x3c   :  { %308 = vmatpush3.msra.mxu1 %v150_v14 }
  0x3d   :  { %309 = vmatprep.subr.mxu1 %v425_v0 }
  0x3e   :  { %310 = vmatpush3.msra.mxu1 %v149_v15 }
  0x3f   :  { %311 = vmatprep.subr.mxu1 %v425_v0 }
  0x40   :  { %312 = vmatpush3.msra.mxu1 %v148_v16 }
  0x41   :  { %313 = vmatprep.subr.mxu1 %v425_v0 }
  0x42   :  { %314 = vmatpush3.msra.mxu1 %v147_v17 }
  0x43   :  { %315 = vmatprep.subr.mxu1 %v425_v0 }
  0x44   :  { %316 = vmatpush3.msra.mxu1 %v146_v18 }
  0x45   :  { %317 = vmatprep.subr.mxu1 %v425_v0 }
  0x46   :  { %318 = vmatpush3.msra.mxu1 %v145_v19 }
  0xeb   :  { %v140_v21 = vpop.f32.mrf.mxu0 }
  0xec   :  { %v141_v22 = vadd.f32 %v257_v20, %v140_v21 }
  0xed   :  { %v286_v23 = vpop.f32.mrf.mxu0 }
  0xee   :  { %330 = vtanh.f32 %v141_v22 }
  0xfb   :  { %v331_v24 = vpop.eup %330 }
  0xfc   :  { %320 = vmatmul.mubr.f32.vlgmr.msra.gmra.mxu1 %v331_v24 }
 0x1bc   :  { %v234_v26 = vpop.f32.mrf.mxu1 }
 0x1bd   :  { %v235_v27 = vadd.f32 %v259_v25, %v234_v26 }
 0x1be   :  { %v321_v28 = vpop.f32.mrf.mxu1 }
 0x1bf   :  { %332 = vtanh.f32 %v235_v27 }
 0x1cc   :  { %v333_v29 = vpop.eup %332 }
 0x1cd   :  { %240 = vst.msk [vmem:[#allocation8] sm:$0xff] %vm239_vm2, %v333_v29 }
 0x1ce   :  { %405 = shalt.err (!%p402_p5)
}
 0x1cf   :  { %250 = dma.vmem_to_hbm [thread:$0]  %s248_s12, 128, %s481_s5, [#allocation4]  }
 0x1d0   :  { %418 = dma.done.wait [#allocation4], 128  }
 0x1d1   :  { %419 = vsyncadd [#allocation4], 4294967168 }
 0x1d2   :  { %254 = vsyncpa [#allocation3], 1 }
 0x1d3   :  { %255 = vsyncpa [#allocation6], 1 }
 0x1d4   :  { %256 = vsyncpa [#allocation4], 1 }

</bundles_post_ra>
